<compile_context>
chip_gen: v5e
topology: v5e:2x2
jax: 0.10.0
libtpu: 0.0.40
codegen_flags: <defaults>
</compile_context>

<pallas_src>
import jax
import jax.numpy as jnp
from jax.experimental import pallas as pl
from jax.experimental.pallas import tpu as pltpu

_LANE = 128      # lane width: last dims padded to a multiple of this
_SUBLANE = 8     # sublane width: batch tile must be a multiple of this


def _round_up(n: int, m: int) -> int:
    return ((n + m - 1) // m) * m


def _mlp_kernel(x_ref, w1_ref, b1_ref, w2_ref, b2_ref, w3_ref, b3_ref, o_ref):
    # x_ref / w*_ref are bf16 (MXU-native inputs); all accumulation is f32.
    x = x_ref[...]

    # Layer 1: Linear(dim_in, hidden) + SiLU   (norm=False -> Identity)
    h = jnp.dot(x, w1_ref[...], preferred_element_type=jnp.float32) + b1_ref[...]
    h = h * jax.nn.sigmoid(h)  # SiLU (sigmoid on EUP, mul on VPU)

    # Layer 2: Linear(hidden, hidden) + SiLU   (depth=2 -> one extra hidden block)
    h = jnp.dot(h.astype(w2_ref.dtype), w2_ref[...],
                preferred_element_type=jnp.float32) + b2_ref[...]
    h = h * jax.nn.sigmoid(h)

    # Final: Linear(hidden, dim_out)
    out = jnp.dot(h.astype(w3_ref.dtype), w3_ref[...],
                  preferred_element_type=jnp.float32) + b3_ref[...]
    o_ref[...] = out.astype(o_ref.dtype)


def mlp_forward(x, params, *, block_b: int = 256):
    """Fused MLP forward pass in one Pallas TPU kernel, tiled over the batch.

    x: [B, dim_in]; params: dict with w1/b1/w2/b2/w3/b3 (f32, [in, out] weights).
    Returns: [B, dim_out] float32.
    """
    w1, b1 = params["w1"], params["b1"]
    w2, b2 = params["w2"], params["b2"]
    w3, b3 = params["w3"], params["b3"]

    B, dim_in = x.shape
    hidden = w1.shape[1]
    dim_out = w3.shape[1]

    # --- pad feature dims to lane multiples; zero padding is exact for this net
    # (padded hidden columns get W-col=0, b=0 -> h=0, SiLU(0)=0 -> no contribution).
    din_p = _round_up(dim_in, _LANE)
    hid_p = _round_up(hidden, _LANE)
    dout_p = _round_up(dim_out, _LANE)

    # --- batch tile: multiple of 8 sublanes, capped at block_b (256 default;
    # multiples of 128 keep the MXU M dimension well fed at real batch sizes).
    tile_b = min(block_b, _round_up(B, _SUBLANE))
    b_p = _round_up(B, tile_b)

    def pad2(a, rows, cols):
        return jnp.pad(a, ((0, rows - a.shape[0]), (0, cols - a.shape[1])))

    # bf16 MXU inputs, f32 biases / accumulation.
    x_p = pad2(x.astype(jnp.float32), b_p, din_p).astype(jnp.bfloat16)
    w1_p = pad2(w1, din_p, hid_p).astype(jnp.bfloat16)
    w2_p = pad2(w2, hid_p, hid_p).astype(jnp.bfloat16)
    w3_p = pad2(w3, hid_p, dout_p).astype(jnp.bfloat16)
    b1_p = pad2(b1, 1, hid_p).astype(jnp.float32)
    b2_p = pad2(b2, 1, hid_p).astype(jnp.float32)
    b3_p = pad2(b3, 1, dout_p).astype(jnp.float32)

    grid = (b_p // tile_b,)

    # Weights/biases: whole array in VMEM, same block every grid step (resident).
    def resident(a):
        return pl.BlockSpec(a.shape, lambda i: (0,) * a.ndim)

    # Advisory cost hint for XLA scheduling around the custom call.
    flops = 2 * b_p * (din_p * hid_p + hid_p * hid_p + hid_p * dout_p)
    bytes_accessed = (
        x_p.size * 2
        + (w1_p.size + w2_p.size + w3_p.size) * 2
        + (b1_p.size + b2_p.size + b3_p.size) * 4
        + b_p * dout_p * 4
    )
    cost = pl.CostEstimate(
        flops=flops, transcendentals=2 * b_p * hid_p, bytes_accessed=bytes_accessed
    )

    # TODO(synk): for real model sizes on v7x (64 MiB VMEM), re-budget the
    # weights-resident strategy and fall back to a K-tiled f32 accumulator
    # (pl.when-gated init/finalize) with vmem_limit_bytes raised if needed.
    # TODO(synk): norm=True (LayerNorm) branch not implemented; default is norm=False.
    out_p = pl.pallas_call(
        _mlp_kernel,
        out_shape=jax.ShapeDtypeStruct((b_p, dout_p), jnp.float32),
        grid=grid,
        in_specs=[
            pl.BlockSpec((tile_b, din_p), lambda i: (i, 0)),  # x streams by batch
            resident(w1_p), resident(b1_p),
            resident(w2_p), resident(b2_p),
            resident(w3_p), resident(b3_p),
        ],
        out_specs=pl.BlockSpec((tile_b, dout_p), lambda i: (i, 0)),
        compiler_params=pltpu.CompilerParams(
            dimension_semantics=("parallel",),  # batch axis: pipelined + dual-TC on v7x
        ),
        cost_estimate=cost,
    )(x_p, w1_p, b1_p, w2_p, b2_p, w3_p, b3_p)

    return out_p[:B, :dim_out]


def init_mlp_params(key, dim_in, dim_out, expansion_factor=2.0, depth=2):
    """Deterministic synthetic parameters matching nn.Linear shapes.

    hidden_dim = int(expansion_factor * dim_out).
    Weights stored as [in_features, out_features], f32.
    """
    assert depth == 2, "this script mirrors the default depth=2 configuration"
    hidden = int(expansion_factor * dim_out)
    k1, k2, k3, k4, k5, k6 = jax.random.split(key, 6)

    def lin_init(kw, kb, fan_in, fan_out):
        bound = 1.0 / jnp.sqrt(fan_in)
        w = jax.random.uniform(kw, (fan_in, fan_out), jnp.float32, -bound, bound)
        b = jax.random.uniform(kb, (1, fan_out), jnp.float32, -bound, bound)
        return w, b

    w1, b1 = lin_init(k1, k2, dim_in, hidden)
    w2, b2 = lin_init(k3, k4, hidden, hidden)
    w3, b3 = lin_init(k5, k6, hidden, dim_out)
    return dict(w1=w1, b1=b1, w2=w2, b2=b2, w3=w3, b3=b3)


def mlp_reference(x, params):
    """Pure-JAX f32 reference for correctness checking."""
    h = x.astype(jnp.float32) @ params["w1"] + params["b1"]
    h = h * jax.nn.sigmoid(h)
    h = h @ params["w2"] + params["b2"]
    h = h * jax.nn.sigmoid(h)
    return h @ params["w3"] + params["b3"]


if __name__ == "__main__":
    # Small shapes consistent with the module: MLP(dim_in=32, dim_out=32),
    # expansion_factor=2.0 -> hidden=64, depth=2, norm=False (Identity).
    B, DIM_IN, DIM_OUT = 8, 32, 32

    key = jax.random.PRNGKey(0)
    kx, kp = jax.random.split(key)
    x = jax.random.normal(kx, (B, DIM_IN), dtype=jnp.float32)
    params = init_mlp_params(kp, DIM_IN, DIM_OUT)

    out = jax.jit(mlp_forward)(x, params)
    out = jax.block_until_ready(out)

    ref = mlp_reference(x, params)
    assert out.shape == (B, DIM_OUT)
    # bf16 MXU inputs with f32 accumulation -> tolerance loosened vs pure-f32 ref.
    assert jnp.allclose(out, ref, atol=2e-2, rtol=2e-2), "mismatch vs. reference"

    print("KERNEL_OK")
</pallas_src>

<mosaic_0001>
module attributes {stable_mosaic.version = 11 : i64} {
  func.func @_mlp_kernel(%arg0: i32, %arg1: memref<8x128xbf16, #tpu.memory_space<vmem>>, %arg2: memref<128x128xbf16, #tpu.memory_space<vmem>>, %arg3: memref<1x128xf32, #tpu.memory_space<vmem>>, %arg4: memref<128x128xbf16, #tpu.memory_space<vmem>>, %arg5: memref<1x128xf32, #tpu.memory_space<vmem>>, %arg6: memref<128x128xbf16, #tpu.memory_space<vmem>>, %arg7: memref<1x128xf32, #tpu.memory_space<vmem>>, %arg8: memref<8x128xf32, #tpu.memory_space<vmem>>) attributes {dimension_semantics = [#tpu.dimension_semantics<parallel>], iteration_bounds = array<i64: 1>, scalar_prefetch = 0 : i64, scratch_operands = 0 : i64, tpu.core_type = #tpu.core_type<tc>, window_params = [{transform_indices = @transform_0, window_bounds = array<i64: 8, 128>}, {pipeline_mode = #tpu.pipeline_mode<synchronous>, transform_indices = @transform_1, window_bounds = array<i64: 128, 128>}, {pipeline_mode = #tpu.pipeline_mode<synchronous>, transform_indices = @transform_2, window_bounds = array<i64: 1, 128>}, {pipeline_mode = #tpu.pipeline_mode<synchronous>, transform_indices = @transform_3, window_bounds = array<i64: 128, 128>}, {pipeline_mode = #tpu.pipeline_mode<synchronous>, transform_indices = @transform_4, window_bounds = array<i64: 1, 128>}, {pipeline_mode = #tpu.pipeline_mode<synchronous>, transform_indices = @transform_5, window_bounds = array<i64: 128, 128>}, {pipeline_mode = #tpu.pipeline_mode<synchronous>, transform_indices = @transform_6, window_bounds = array<i64: 1, 128>}, {transform_indices = @transform_7, window_bounds = array<i64: 8, 128>}]} {
    %c0 = arith.constant 0 : index
    %c0_0 = arith.constant 0 : index
    %0 = vector.load %arg1[%c0, %c0_0] : memref<8x128xbf16, #tpu.memory_space<vmem>>, vector<8x128xbf16>
    %c0_1 = arith.constant 0 : index
    %c0_2 = arith.constant 0 : index
    %1 = vector.load %arg2[%c0_1, %c0_2] : memref<128x128xbf16, #tpu.memory_space<vmem>>, vector<128x128xbf16>
    %cst = arith.constant dense<0.000000e+00> : vector<8x128xf32>
    %2 = tpu.matmul %0, %1, %cst {dimension_numbers = #tpu.dot_dimension_numbers<[1], [0], [0], [1], [0, 0, 1, 1], [], []>} : vector<8x128xbf16>, vector<128x128xbf16>, vector<8x128xf32> -> vector<8x128xf32>
    %c0_3 = arith.constant 0 : index
    %c0_4 = arith.constant 0 : index
    %3 = vector.load %arg3[%c0_3, %c0_4] : memref<1x128xf32, #tpu.memory_space<vmem>>, vector<1x128xf32>
    %4 = vector.broadcast %3 : vector<1x128xf32> to vector<8x128xf32>
    %5 = arith.addf %2, %4 : vector<8x128xf32>
    %6 = arith.negf %5 : vector<8x128xf32>
    %7 = math.exp %6 : vector<8x128xf32>
    %cst_5 = arith.constant 1.000000e+00 : f32
    %8 = vector.broadcast %cst_5 : f32 to vector<8x128xf32>
    %9 = arith.addf %8, %7 : vector<8x128xf32>
    %10 = arith.divf %8, %9 : vector<8x128xf32>
    %11 = arith.mulf %5, %10 : vector<8x128xf32>
    %12 = arith.truncf %11 : vector<8x128xf32> to vector<8x128xbf16>
    %c0_6 = arith.constant 0 : index
    %c0_7 = arith.constant 0 : index
    %13 = vector.load %arg4[%c0_6, %c0_7] : memref<128x128xbf16, #tpu.memory_space<vmem>>, vector<128x128xbf16>
    %cst_8 = arith.constant dense<0.000000e+00> : vector<8x128xf32>
    %14 = tpu.matmul %12, %13, %cst_8 {dimension_numbers = #tpu.dot_dimension_numbers<[1], [0], [0], [1], [0, 0, 1, 1], [], []>} : vector<8x128xbf16>, vector<128x128xbf16>, vector<8x128xf32> -> vector<8x128xf32>
    %c0_9 = arith.constant 0 : index
    %c0_10 = arith.constant 0 : index
    %15 = vector.load %arg5[%c0_9, %c0_10] : memref<1x128xf32, #tpu.memory_space<vmem>>, vector<1x128xf32>
    %16 = vector.broadcast %15 : vector<1x128xf32> to vector<8x128xf32>
    %17 = arith.addf %14, %16 : vector<8x128xf32>
    %18 = arith.negf %17 : vector<8x128xf32>
    %19 = math.exp %18 : vector<8x128xf32>
    %cst_11 = arith.constant 1.000000e+00 : f32
    %20 = vector.broadcast %cst_11 : f32 to vector<8x128xf32>
    %21 = arith.addf %20, %19 : vector<8x128xf32>
    %22 = arith.divf %20, %21 : vector<8x128xf32>
    %23 = arith.mulf %17, %22 : vector<8x128xf32>
    %24 = arith.truncf %23 : vector<8x128xf32> to vector<8x128xbf16>
    %c0_12 = arith.constant 0 : index
    %c0_13 = arith.constant 0 : index
    %25 = vector.load %arg6[%c0_12, %c0_13] : memref<128x128xbf16, #tpu.memory_space<vmem>>, vector<128x128xbf16>
    %cst_14 = arith.constant dense<0.000000e+00> : vector<8x128xf32>
    %26 = tpu.matmul %24, %25, %cst_14 {dimension_numbers = #tpu.dot_dimension_numbers<[1], [0], [0], [1], [0, 0, 1, 1], [], []>} : vector<8x128xbf16>, vector<128x128xbf16>, vector<8x128xf32> -> vector<8x128xf32>
    %c0_15 = arith.constant 0 : index
    %c0_16 = arith.constant 0 : index
    %27 = vector.load %arg7[%c0_15, %c0_16] : memref<1x128xf32, #tpu.memory_space<vmem>>, vector<1x128xf32>
    %28 = vector.broadcast %27 : vector<1x128xf32> to vector<8x128xf32>
    %29 = arith.addf %26, %28 : vector<8x128xf32>
    %c0_17 = arith.constant 0 : index
    %c0_18 = arith.constant 0 : index
    %30 = vector.load %arg8[%c0_17, %c0_18] : memref<8x128xf32, #tpu.memory_space<vmem>>, vector<8x128xf32>
    tpu.vector_store %arg8[%c0_17, %c0_18], %29 {strides = array<i32>} : memref<8x128xf32, #tpu.memory_space<vmem>>, vector<8x128xf32>,
    return
  }
  func.func @transform_0(%arg0: i32) -> (i32, i32) {
    %c0_i32 = arith.constant 0 : i32
    %c0_i32_0 = arith.constant 0 : i32
    return %arg0, %c0_i32 : i32, i32
  }
  func.func @transform_1(%arg0: i32) -> (i32, i32) {
    %c0_i32 = arith.constant 0 : i32
    %c0_i32_0 = arith.constant 0 : i32
    %c0_i32_1 = arith.constant 0 : i32
    return %c0_i32, %c0_i32_0 : i32, i32
  }
  func.func @transform_2(%arg0: i32) -> (i32, i32) {
    %c0_i32 = arith.constant 0 : i32
    %c0_i32_0 = arith.constant 0 : i32
    %c0_i32_1 = arith.constant 0 : i32
    return %c0_i32, %c0_i32_0 : i32, i32
  }
  func.func @transform_3(%arg0: i32) -> (i32, i32) {
    %c0_i32 = arith.constant 0 : i32
    %c0_i32_0 = arith.constant 0 : i32
    %c0_i32_1 = arith.constant 0 : i32
    return %c0_i32, %c0_i32_0 : i32, i32
  }
  func.func @transform_4(%arg0: i32) -> (i32, i32) {
    %c0_i32 = arith.constant 0 : i32
    %c0_i32_0 = arith.constant 0 : i32
    %c0_i32_1 = arith.constant 0 : i32
    return %c0_i32, %c0_i32_0 : i32, i32
  }
  func.func @transform_5(%arg0: i32) -> (i32, i32) {
    %c0_i32 = arith.constant 0 : i32
    %c0_i32_0 = arith.constant 0 : i32
    %c0_i32_1 = arith.constant 0 : i32
    return %c0_i32, %c0_i32_0 : i32, i32
  }
  func.func @transform_6(%arg0: i32) -> (i32, i32) {
    %c0_i32 = arith.constant 0 : i32
    %c0_i32_0 = arith.constant 0 : i32
    %c0_i32_1 = arith.constant 0 : i32
    return %c0_i32, %c0_i32_0 : i32, i32
  }
  func.func @transform_7(%arg0: i32) -> (i32, i32) {
    %c0_i32 = arith.constant 0 : i32
    %c0_i32_0 = arith.constant 0 : i32
    return %arg0, %c0_i32 : i32, i32
  }
}

</mosaic_0001>

<bundles_post_ra>
// kernel: mlp_forward.1
= control target key start
LH: loop header
LB: loop body
LE: loop exit
PB: predicated region body
PF: predicated region fallthrough
CT: control target
= control target key end

     0   :  { %s618_s0 = inlined_call_operand.vmem [shape: bf16[8,128], index: 0, kind: input, shape index: {}]   ;;  %s619_s1 = inlined_call_operand.vmem [shape: bf16[128,128], index: 1, kind: input, shape index: {}]   ;;  %s620_s2 = inlined_call_operand.vmem [shape: f32[1,128], index: 2, kind: input, shape index: {}]   ;;  %s621_s3 = inlined_call_operand.vmem [shape: bf16[128,128], index: 3, kind: input, shape index: {}]   ;;  %s622_s4 = inlined_call_operand.vmem [shape: f32[1,128], index: 4, kind: input, shape index: {}]   ;;  %s623_s5 = inlined_call_operand.vmem [shape: bf16[128,128], index: 5, kind: input, shape index: {}]   ;;  %s624_s6 = inlined_call_operand.vmem [shape: f32[1,128], index: 6, kind: input, shape index: {}]   ;;  %s625_s7 = inlined_call_operand.hbm [shape: f32[8,128], index: 7, kind: output, shape index: {}]  }
   0x1   :  { %v435_v0 = vld [vmem:[%s619_s1 + $0x38] sm:$0xff]  ;;  %v434_v1 = vld [vmem:[%s619_s1 + $0x30] sm:$0xff] }
   0x2   :  { %96 = vmatpush.bf16.msra.mxu0 %v435_v0 }
   0x3   :  { %12 = vsyncpa [#allocation3], 0  ;;  %v433_v2 = vld [vmem:[%s619_s1 + $0x28] sm:$0xff]  ;;  %v432_v3 = vld [vmem:[%s619_s1 + $0x20] sm:$0xff]  ;;  %s490_s26 = smov [#allocation2]   ;;  %s321_s30 = sshll.u32 %s625_s7, 4  ;;  %s322_s30 = int_to_ptr.hbm [resolvable:$true] %s321_s30 }
   0x4   :  { %v431_v4 = vld [vmem:[%s619_s1 + $0x18] sm:$0xff]  ;;  %v430_v5 = vld [vmem:[%s619_s1 + $0x10] sm:$0xff]  ;;  %v429_v6 = vld [vmem:[%s619_s1 + $0x8] sm:$0xff]  ;;  %s319_s27 = sshll.u32 %s490_s26, 4  ;;  %s320_s27 = int_to_ptr.vmem [resolvable:$true] %s319_s27 }
   0x5   :  { %v428_v7 = vld [vmem:[%s619_s1] sm:$0xff]  ;;  %v443_v9 = vld [vmem:[%s621_s3 + $0x38] sm:$0xff]  ;;  %v442_v10 = vld [vmem:[%s621_s3 + $0x30] sm:$0xff] }
   0x6   :  { %97 = vmatpush.bf16.msra.mxu0 %v434_v1  ;;  %v27_v8 = vld [vmem:[%s618_s0] sm:$0xf]  ;;  %198 = vmatpush.bf16.msra.mxu1 %v443_v9  ;;  %v441_v11 = vld [vmem:[%s621_s3 + $0x28] sm:$0xff]  ;;  %v439_v13 = vld [vmem:[%s621_s3 + $0x18] sm:$0xff] }
   0x7   :  { %v440_v12 = vld [vmem:[%s621_s3 + $0x20] sm:$0xff]  ;;  %v438_v14 = vld [vmem:[%s621_s3 + $0x10] sm:$0xff]  ;;  %v437_v15 = vld [vmem:[%s621_s3 + $0x8] sm:$0xff] }
   0x8   :  { %v436_v16 = vld [vmem:[%s621_s3] sm:$0xff]  ;;  %v451_v36 = vld [vmem:[%s623_s5 + $0x38] sm:$0xff]  ;;  %v450_v37 = vld [vmem:[%s623_s5 + $0x30] sm:$0xff] }
   0x9   :  { %v453_v17 = vld [vmem:[%s620_s2] ss:$0 sm:$0xff]  ;;  %300 = vmatpush.bf16.msra.mxu2 %v451_v36  ;;  %v449_v38 = vld [vmem:[%s623_s5 + $0x28] sm:$0xff]  ;;  %v447_v40 = vld [vmem:[%s623_s5 + $0x18] sm:$0xff] }
   0xa   :  { %98 = vmatpush.bf16.msra.mxu0 %v433_v2  ;;  %199 = vmatpush.bf16.msra.mxu1 %v442_v10  ;;  %v448_v39 = vld [vmem:[%s623_s5 + $0x20] sm:$0xff]  ;;  %v446_v41 = vld [vmem:[%s623_s5 + $0x10] sm:$0xff]  ;;  %v445_v42 = vld [vmem:[%s623_s5 + $0x8] sm:$0xff] }
   0xb   :  { %v444_v43 = vld [vmem:[%s623_s5] sm:$0xff] }
   0xc   :  { %v454_v44 = vld [vmem:[%s622_s4] ss:$0 sm:$0xff] }
   0xd   :  { %301 = vmatpush.bf16.msra.mxu2 %v450_v37  ;;  %v455_v63 = vld [vmem:[%s624_s6] ss:$0 sm:$0xff] }
   0xe   :  { %99 = vmatpush.bf16.msra.mxu0 %v432_v3  ;;  %200 = vmatpush.bf16.msra.mxu1 %v441_v11 }
  0x11   :  { %302 = vmatpush.bf16.msra.mxu2 %v449_v38 }
  0x12   :  { %100 = vmatpush.bf16.msra.mxu0 %v431_v4  ;;  %201 = vmatpush.bf16.msra.mxu1 %v440_v12 }
  0x15   :  { %303 = vmatpush.bf16.msra.mxu2 %v448_v39 }
  0x16   :  { %101 = vmatpush.bf16.msra.mxu0 %v430_v5  ;;  %202 = vmatpush.bf16.msra.mxu1 %v439_v13 }
  0x19   :  { %304 = vmatpush.bf16.msra.mxu2 %v447_v40 }
  0x1a   :  { %102 = vmatpush.bf16.msra.mxu0 %v429_v6  ;;  %203 = vmatpush.bf16.msra.mxu1 %v438_v14 }
  0x1d   :  { %305 = vmatpush.bf16.msra.mxu2 %v446_v41 }
  0x1e   :  { %103 = vmatpush.bf16.msra.mxu0 %v428_v7  ;;  %204 = vmatpush.bf16.msra.mxu1 %v437_v15 }
  0x21   :  { %104 = vmatmul.bf16.vlgmr.msra.gmra.mxu0 %v27_v8  ;;  %306 = vmatpush.bf16.msra.mxu2 %v445_v42 }
  0x22   :  { %205 = vmatpush.bf16.msra.mxu1 %v436_v16 }
  0x25   :  { %307 = vmatpush.bf16.msra.mxu2 %v444_v43 }
  0x9e   :  { %v105_v18 = vpop.f32.mrf.mxu0 }
  0x9f   :  { %v106_v19 = vadd.f32 %v453_v17, %v105_v18 }
  0xa1   :  { %v362_v20 = vmul.f32 -1.442695, %v106_v19 }
  0xa3   :  { %456 = vpow2.f32 %v362_v20 }
  0xa6   :  { %v107_v21 = vpop.f32.mrf.mxu0 }
  0xa9   :  { %v457_v22 = vpop.eup %456 }
  0xaa   :  { %v112_v23 = vadd.f32 1.0, %v457_v22 }
  0xac   :  { %458 = vrcp.f32 %v112_v23  ;;  %v124_v27 = vand.u32 2147483648, %v112_v23  ;;  %v122_v29 = vand.u32 2147483647, %v112_v23  ;;  %vm118_vm1 = vweird.f32 %v112_v23 }
  0xae   :  { %v125_v31 = vor.u32 1.1754944e-38, %v124_v27  ;;  %vm123_vm3 = vcmp.eq.f32.partialorder %v122_v29, 8.507059e+37 }
  0xb2   :  { %v459_v24 = vpop.eup %458 }
  0xb3   :  { %v114_v25 = vmul.f32 %v459_v24, %v112_v23  ;;  %vm119_vm0 = vweird.f32 %v459_v24 }
  0xb4   :  { %vm120_vm2 = vmor %vm118_vm1, %vm119_vm0 }
  0xb5   :  { %v115_v26 = vsub.f32 1.0, %v114_v25 }
  0xb7   :  { %v116_v28 = vmul.f32 %v459_v24, %v115_v26 }
  0xb9   :  { %v117_v30 = vadd.f32 %v459_v24, %v116_v28 }
  0xbb   :  { %v121_v32 = vsel %vm120_vm2, %v459_v24, %v117_v30 }
  0xbc   :  { %v126_v33 = vsel %vm123_vm3, %v125_v31, %v121_v32 }
  0xbd   :  { %v128_v34 = vmul.f32 %v126_v33, %v106_v19 }
  0xbf   :  { %v129_v35 = vpack.c.bf16 %v128_v34, %v128_v34 }
  0xc1   :  { %206 = vmatmul.bf16.vlgmr.msra.gmra.mxu1 %v129_v35 }
 0x13e   :  { %v207_v45 = vpop.f32.mrf.mxu1 }
 0x13f   :  { %v208_v46 = vadd.f32 %v454_v44, %v207_v45 }
 0x141   :  { %v395_v47 = vmul.f32 -1.442695, %v208_v46 }
 0x143   :  { %460 = vpow2.f32 %v395_v47 }
 0x146   :  { %v209_v48 = vpop.f32.mrf.mxu1 }
 0x149   :  { %v461_v49 = vpop.eup %460 }
 0x14a   :  { %v214_v50 = vadd.f32 1.0, %v461_v49 }
 0x14c   :  { %462 = vrcp.f32 %v214_v50  ;;  %v226_v54 = vand.u32 2147483648, %v214_v50  ;;  %v224_v56 = vand.u32 2147483647, %v214_v50  ;;  %vm220_vm5 = vweird.f32 %v214_v50 }
 0x14e   :  { %v227_v58 = vor.u32 1.1754944e-38, %v226_v54  ;;  %vm225_vm7 = vcmp.eq.f32.partialorder %v224_v56, 8.507059e+37 }
 0x152   :  { %v463_v51 = vpop.eup %462 }
 0x153   :  { %v216_v52 = vmul.f32 %v463_v51, %v214_v50  ;;  %vm221_vm4 = vweird.f32 %v463_v51 }
 0x154   :  { %vm222_vm6 = vmor %vm220_vm5, %vm221_vm4 }
 0x155   :  { %v217_v53 = vsub.f32 1.0, %v216_v52 }
 0x157   :  { %v218_v55 = vmul.f32 %v463_v51, %v217_v53 }
 0x159   :  { %v219_v57 = vadd.f32 %v463_v51, %v218_v55 }
 0x15b   :  { %v223_v59 = vsel %vm222_vm6, %v463_v51, %v219_v57 }
 0x15c   :  { %v228_v60 = vsel %vm225_vm7, %v227_v58, %v223_v59 }
 0x15d   :  { %v230_v61 = vmul.f32 %v228_v60, %v208_v46 }
 0x15f   :  { %v231_v62 = vpack.c.bf16 %v230_v61, %v230_v61 }
 0x161   :  { %308 = vmatmul.bf16.vlgmr.msra.gmra.mxu2 %v231_v62 }
 0x1e4   :  { %v309_v0 = vpop.f32.mrf.mxu2 }
 0x1e5   :  { %v310_v1 = vadd.f32 %v455_v63, %v309_v0 }
 0x1e7   :  { %313 = vst [vmem:[#allocation2] sm:$0xff] %v310_v1 }
 0x1e8   :  { %324 = dma.vmem_to_hbm [thread:$0]  %s320_s27, 128, %s322_s30, [#allocation3]  }
 0x1ec   :  { %v311_v2 = vpop.f32.mrf.mxu2 }
 0x1ed   :  { %488 = dma.done.wait [#allocation3], 128  }
 0x1ee   :  { %489 = vsyncadd [#allocation3], 4294967168 }
 0x1ef   :  { %329 = vsyncpa [#allocation3], 1 }

</bundles_post_ra>
